<compile_context>
chip_gen: v6e
topology: v6e:2x2x1
jax: 0.10.0
libtpu: 0.0.40
codegen_flags: <defaults>
</compile_context>

<pallas_src>
import functools

import jax
import jax.numpy as jnp
import numpy as np
from jax.experimental import pallas as pl
from jax.experimental.pallas import tpu as pltpu


def _round_up(x, m):
    return ((x + m - 1) // m) * m


def _choose_tiles(N, K, tn, tk):
    """Clip preferred tn/tk to the lane-aligned problem (256-multiples for full
    v6e/v7x MXU occupancy) and return the padded weight extents."""
    tn = min(tn, _round_up(N, 256))
    tk = min(tk, _round_up(K, 256))
    # v7x megacore: prefer >= 2 N blocks so both TensorCores get a block even when
    # M fits a single block (decode). Only kicks in for small layers (N <= tn).
    if _round_up(N, tn) // tn == 1 and _round_up(N, 256) > 256:
        tn = 256
    return tn, tk, _round_up(N, tn), _round_up(K, tk)


def _make_kernel(has_bias, acc_is_out, compute_dtype):
    """One (tm, tn) output tile, accumulated in f32 over the K grid axis."""

    def kernel(*refs):
        if acc_is_out:                      # f32 output: accumulate straight into o_ref
            if has_bias:
                x_ref, w_ref, s_ref, b_ref, o_ref = refs
            else:
                x_ref, w_ref, s_ref, o_ref = refs
            acc_ref = o_ref
        else:                               # 16-bit output: f32 VMEM scratch accumulator
            if has_bias:
                x_ref, w_ref, s_ref, b_ref, o_ref, acc_ref = refs
            else:
                x_ref, w_ref, s_ref, o_ref, acc_ref = refs

        k = pl.program_id(2)

        @pl.when(k == 0)
        def _():
            acc_ref[...] = jnp.zeros_like(acc_ref)

        # int8 -> bf16 dequant is exact ([-128,127] representable); bf16xbf16 is the
        # native MXU mode. Casting f32 activations to bf16 is the W8A16 approximation.
        x = x_ref[...].astype(compute_dtype)
        w = w_ref[...].astype(compute_dtype)
        acc_ref[...] += jnp.dot(x, w, preferred_element_type=jnp.float32)

        @pl.when(k == pl.num_programs(2) - 1)
        def _():
            out = acc_ref[...] * s_ref[...].astype(jnp.float32)
            if has_bias:
                out = out + b_ref[...].astype(jnp.float32)
            o_ref[...] = out.astype(o_ref.dtype)

    return kernel


@functools.partial(jax.jit, static_argnames=("N", "tm", "tn", "tk", "compute_dtype"))
def _w8a16_matmul_padded(x, w_t_p, scales_p, bias_p, *, N, tm, tn, tk,
                         compute_dtype=jnp.bfloat16):
    """out = (x @ w_t) * scales [+ bias], w_t_p pre-padded (Kp, Np) int8 in (K, N) layout."""
    Kp, Np = w_t_p.shape
    *lead, K = x.shape
    assert K <= Kp and Np % tn == 0 and Kp % tk == 0
    M = int(np.prod(lead)) if lead else 1

    out_dtype = jnp.result_type(x.dtype, scales_p.dtype)   # mirrors torch promotion
    acc_is_out = out_dtype == jnp.float32

    x2 = x.reshape(M, K)
    tm = min(tm, _round_up(M, 16))          # 16 covers bf16/f32 sublane packing
    Mp = _round_up(M, tm)
    if (Mp, Kp) != (M, K):
        x2 = jnp.pad(x2, ((0, Mp - M), (0, Kp - K)))

    grid = (Mp // tm, Np // tn, Kp // tk)

    in_specs = [
        pl.BlockSpec((tm, tk), lambda i, j, k: (i, k)),   # activation tile
        pl.BlockSpec((tk, tn), lambda i, j, k: (k, j)),   # int8 weight tile (K, N)
        pl.BlockSpec((1, tn), lambda i, j, k: (0, j)),    # scales tile
    ]
    operands = [x2, w_t_p, scales_p]
    has_bias = bias_p is not None
    if has_bias:
        in_specs.append(pl.BlockSpec((1, tn), lambda i, j, k: (0, j)))
        operands.append(bias_p)

    scratch_shapes = [] if acc_is_out else [pltpu.VMEM((tm, tn), jnp.float32)]

    # Double-buffered VMEM footprint; raise the scoped limit only when we would exceed
    # the most conservative default (16 MiB on v5e), capped at v7x's 64 MiB physical VMEM.
    vmem_bytes = (2 * tm * tk * x2.dtype.itemsize                 # activations
                  + 2 * tk * tn * 1                               # int8 weights
                  + 2 * tm * tn * jnp.dtype(out_dtype).itemsize   # output
                  + (0 if acc_is_out else tm * tn * 4)            # scratch accumulator
                  + 4 * 2 * tn * 4)                               # scales / bias
    vmem_limit = None
    if vmem_bytes > 14 * 1024 * 1024:
        vmem_limit = min(int(vmem_bytes * 3 // 2), 64 * 1024 * 1024)

    out2 = pl.pallas_call(
        _make_kernel(has_bias, acc_is_out, compute_dtype),
        out_shape=jax.ShapeDtypeStruct((Mp, Np), out_dtype),
        grid_spec=pltpu.PrefetchScalarGridSpec(
            num_scalar_prefetch=0,
            grid=grid,
            in_specs=in_specs,
            out_specs=pl.BlockSpec((tm, tn), lambda i, j, k: (i, j)),
            scratch_shapes=scratch_shapes,
        ),
        compiler_params=pltpu.CompilerParams(
            # M/N blocks shard across TensorCores (v7x megacore); K is the reduction.
            dimension_semantics=("parallel", "parallel", "arbitrary"),
            vmem_limit_bytes=vmem_limit,
        ),
    )(*operands)

    out2 = out2[:M, :N]
    return out2.reshape(*lead, N)


def _pad_cols(a, Np):
    return a if a.shape[1] == Np else jnp.pad(a, ((0, 0), (0, Np - a.shape[1])))


def w8_a16_forward(int8_weights, x, scales, bias=None, *, tm=256, tn=512, tk=2048,
                   compute_dtype=jnp.bfloat16):
    """PyTorch-signature wrapper: int8_weights is (out_features, in_features).

    NOTE: transposes + pads the weight in HBM on every call; use W8A16LinearLayer
    (which does this once at init) for repeated forwards.
    """
    N, K = int8_weights.shape
    tn, tk, Np, Kp = _choose_tiles(N, K, tn, tk)
    w_t = jnp.asarray(int8_weights).T
    if (Kp, Np) != (K, N):
        w_t = jnp.pad(w_t, ((0, Kp - K), (0, Np - N)))
    scales_p = _pad_cols(jnp.asarray(scales).reshape(1, N), Np)
    bias_p = None if bias is None else _pad_cols(jnp.asarray(bias).reshape(1, N), Np)
    return _w8a16_matmul_padded(x, w_t, scales_p, bias_p, N=N, tm=tm, tn=tn, tk=tk,
                                compute_dtype=compute_dtype)


class W8A16LinearLayer:
    """Deterministically-initialized JAX port of the PyTorch module."""

    def __init__(self, in_features, out_features, bias=True, dtype=jnp.float32,
                 key=None, tm=256, tn=512, tk=2048, compute_dtype=jnp.bfloat16):
        if key is None:
            key = jax.random.PRNGKey(0)
        k_w, k_s, k_b = jax.random.split(key, 3)
        self.in_features, self.out_features = in_features, out_features
        self.int8_weights = jax.random.randint(
            k_w, (out_features, in_features), -128, 127, dtype=jnp.int8)
        self.scales = jax.random.normal(k_s, (out_features,), dtype=dtype)
        self.bias = (jax.random.normal(k_b, (1, out_features), dtype=dtype)
                     if bias else None)

        # One-time prep: transpose to (K, N) (MXU-natural, lane-dense output in N) and
        # pre-pad to the tile grid -> zero per-call weight copies in HBM.
        self._tm, self._compute_dtype = tm, compute_dtype
        N, K = out_features, in_features
        self._tn, self._tk, Np, Kp = _choose_tiles(N, K, tn, tk)
        w_t = self.int8_weights.T
        if (Kp, Np) != (K, N):
            w_t = jnp.pad(w_t, ((0, Kp - K), (0, Np - N)))
        self._w_t_padded = w_t
        self._scales_padded = _pad_cols(self.scales.reshape(1, N), Np)
        self._bias_padded = (None if self.bias is None
                             else _pad_cols(self.bias.reshape(1, N), Np))
        # TODO(synk): quantize() (computing scales from fp weights) is plain JAX math,
        # not a kernel; omitted since forward() is the op under test.

    def __call__(self, x):
        return _w8a16_matmul_padded(
            x, self._w_t_padded, self._scales_padded, self._bias_padded,
            N=self.out_features, tm=self._tm, tn=self._tn, tk=self._tk,
            compute_dtype=self._compute_dtype)


def _ref_f32(int8_weights, x, scales, bias):
    """f32 reference of the PyTorch semantics."""
    out = (x.astype(jnp.float32) @ int8_weights.astype(jnp.float32).T
           ) * scales.astype(jnp.float32)
    if bias is not None:
        out = out + bias.astype(jnp.float32)
    return out


if __name__ == "__main__":
    key = jax.random.PRNGKey(0)

    # --- Test 1: aligned shapes, bf16 activations (the "A16" path), f32 scales/bias. ---
    k_layer, k_x, key = jax.random.split(key, 3)
    batch, seq, in_features, out_features = 2, 8, 128, 128
    layer = W8A16LinearLayer(in_features, out_features, bias=True,
                             dtype=jnp.float32, key=k_layer)
    x = jax.random.normal(k_x, (batch, seq, in_features), dtype=jnp.bfloat16)
    out = jax.block_until_ready(layer(x))
    ref = _ref_f32(layer.int8_weights, x, layer.scales, layer.bias)
    assert out.shape == (batch, seq, out_features) and out.dtype == jnp.float32
    np.testing.assert_allclose(np.asarray(out), np.asarray(ref), rtol=1e-4, atol=1e-2)

    # --- Test 2: ragged shapes, f32 activations, default bf16 MXU compute (approx). ---
    k_layer, k_x, key = jax.random.split(key, 3)
    batch, seq, in_features, out_features = 3, 5, 200, 72
    layer2 = W8A16LinearLayer(in_features, out_features, bias=True,
                              dtype=jnp.float32, key=k_layer)
    x2 = jax.random.normal(k_x, (batch, seq, in_features), dtype=jnp.float32)
    out2 = jax.block_until_ready(layer2(x2))
    # Reference mirrors the documented bf16-activation approximation of the default path.
    ref2 = _ref_f32(layer2.int8_weights, x2.astype(jnp.bfloat16), layer2.scales,
                    layer2.bias)
    assert out2.shape == (batch, seq, out_features)
    np.testing.assert_allclose(np.asarray(out2), np.asarray(ref2), rtol=1e-4, atol=1e-2)

    # --- Test 3: exact f32 compute path (opt-in), no bias, functional PyTorch-style API. -
    k_layer, k_x, key = jax.random.split(key, 3)
    layer3 = W8A16LinearLayer(96, 160, bias=False, dtype=jnp.float32, key=k_layer)
    x3 = jax.random.normal(k_x, (4, 96), dtype=jnp.float32)
    out3 = jax.block_until_ready(
        w8_a16_forward(layer3.int8_weights, x3, layer3.scales, None,
                       compute_dtype=jnp.float32))
    ref3 = _ref_f32(layer3.int8_weights, x3, layer3.scales, None)
    assert out3.shape == (4, 160)
    np.testing.assert_allclose(np.asarray(out3), np.asarray(ref3), rtol=1e-5, atol=1e-3)

    # --- Test 4: fully bf16 (scales/bias/x) -> bf16 output, scratch-accumulator path. ---
    k_layer, k_x = jax.random.split(key)
    layer4 = W8A16LinearLayer(128, 128, bias=True, dtype=jnp.bfloat16, key=k_layer)
    x4 = jax.random.normal(k_x, (2, 8, 128), dtype=jnp.bfloat16)
    out4 = jax.block_until_ready(layer4(x4))
    ref4 = _ref_f32(layer4.int8_weights, x4, layer4.scales,
                    layer4.bias).astype(jnp.bfloat16)
    assert out4.shape == (2, 8, 128) and out4.dtype == jnp.bfloat16
    np.testing.assert_allclose(np.asarray(out4, dtype=np.float32),
                               np.asarray(ref4, dtype=np.float32),
                               rtol=2e-2, atol=1e-2)

    print("KERNEL_OK")
</pallas_src>

<mosaic_0001>
module attributes {stable_mosaic.version = 11 : i64} {
  func.func @kernel(%arg0: i32, %arg1: i32, %arg2: i32, %arg3: memref<16x256xbf16, #tpu.memory_space<vmem>>, %arg4: memref<256x256xi8, #tpu.memory_space<vmem>>, %arg5: memref<1x256xf32, #tpu.memory_space<vmem>>, %arg6: memref<1x256xf32, #tpu.memory_space<vmem>>, %arg7: memref<16x256xf32, #tpu.memory_space<vmem>>) attributes {dimension_semantics = [#tpu.dimension_semantics<parallel>, #tpu.dimension_semantics<parallel>, #tpu.dimension_semantics<arbitrary>], iteration_bounds = array<i64: 1, 1, 1>, scalar_prefetch = 0 : i64, scratch_operands = 0 : i64, tpu.core_type = #tpu.core_type<tc>, window_params = [{transform_indices = @transform_0, window_bounds = array<i64: 16, 256>}, {transform_indices = @transform_1, window_bounds = array<i64: 256, 256>}, {transform_indices = @transform_2, window_bounds = array<i64: 1, 256>}, {transform_indices = @transform_3, window_bounds = array<i64: 1, 256>}, {transform_indices = @transform_4, window_bounds = array<i64: 16, 256>}]} {
    %c0_i32 = arith.constant 0 : i32
    %0 = arith.cmpi eq, %arg2, %c0_i32 : i32
    %1 = arith.extui %0 : i1 to i32
    %c0_i32_0 = arith.constant 0 : i32
    %2 = arith.cmpi ne, %1, %c0_i32_0 : i32
    scf.if %2 {
      %cst_10 = arith.constant 0.000000e+00 : f32
      %13 = vector.broadcast %cst_10 : f32 to vector<16x256xf32>
      %c0_11 = arith.constant 0 : index
      %c0_12 = arith.constant 0 : index
      %14 = vector.load %arg7[%c0_11, %c0_12] : memref<16x256xf32, #tpu.memory_space<vmem>>, vector<16x256xf32>
      tpu.vector_store %arg7[%c0_11, %c0_12], %13 {strides = array<i32>} : memref<16x256xf32, #tpu.memory_space<vmem>>, vector<16x256xf32>,
    } else {
    }
    %c0 = arith.constant 0 : index
    %c0_1 = arith.constant 0 : index
    %3 = vector.load %arg3[%c0, %c0_1] : memref<16x256xbf16, #tpu.memory_space<vmem>>, vector<16x256xbf16>
    %c0_2 = arith.constant 0 : index
    %c0_3 = arith.constant 0 : index
    %4 = vector.load %arg4[%c0_2, %c0_3] : memref<256x256xi8, #tpu.memory_space<vmem>>, vector<256x256xi8>
    %5 = arith.sitofp %4 : vector<256x256xi8> to vector<256x256xbf16>
    %c0_4 = arith.constant 0 : index
    %c0_5 = arith.constant 0 : index
    %6 = vector.load %arg7[%c0_4, %c0_5] : memref<16x256xf32, #tpu.memory_space<vmem>>, vector<16x256xf32>
    %cst = arith.constant dense<0.000000e+00> : vector<16x256xf32>
    %7 = tpu.matmul %3, %5, %cst {dimension_numbers = #tpu.dot_dimension_numbers<[1], [0], [0], [1], [0, 0, 1, 1], [], []>} : vector<16x256xbf16>, vector<256x256xbf16>, vector<16x256xf32> -> vector<16x256xf32>
    %8 = arith.addf %6, %7 : vector<16x256xf32>
    %c0_6 = arith.constant 0 : index
    %c0_7 = arith.constant 0 : index
    %9 = vector.load %arg7[%c0_6, %c0_7] : memref<16x256xf32, #tpu.memory_space<vmem>>, vector<16x256xf32>
    tpu.vector_store %arg7[%c0_6, %c0_7], %8 {strides = array<i32>} : memref<16x256xf32, #tpu.memory_space<vmem>>, vector<16x256xf32>,
    %c0_i32_8 = arith.constant 0 : i32
    %10 = arith.cmpi eq, %arg2, %c0_i32_8 : i32
    %11 = arith.extui %10 : i1 to i32
    %c0_i32_9 = arith.constant 0 : i32
    %12 = arith.cmpi ne, %11, %c0_i32_9 : i32
    scf.if %12 {
      %c0_10 = arith.constant 0 : index
      %c0_11 = arith.constant 0 : index
      %13 = vector.load %arg7[%c0_10, %c0_11] : memref<16x256xf32, #tpu.memory_space<vmem>>, vector<16x256xf32>
      %c0_12 = arith.constant 0 : index
      %c0_13 = arith.constant 0 : index
      %14 = vector.load %arg5[%c0_12, %c0_13] : memref<1x256xf32, #tpu.memory_space<vmem>>, vector<1x256xf32>
      %15 = vector.broadcast %14 : vector<1x256xf32> to vector<16x256xf32>
      %16 = arith.mulf %13, %15 : vector<16x256xf32>
      %c0_14 = arith.constant 0 : index
      %c0_15 = arith.constant 0 : index
      %17 = vector.load %arg6[%c0_14, %c0_15] : memref<1x256xf32, #tpu.memory_space<vmem>>, vector<1x256xf32>
      %18 = vector.broadcast %17 : vector<1x256xf32> to vector<16x256xf32>
      %19 = arith.addf %16, %18 : vector<16x256xf32>
      %c0_16 = arith.constant 0 : index
      %c0_17 = arith.constant 0 : index
      %20 = vector.load %arg7[%c0_16, %c0_17] : memref<16x256xf32, #tpu.memory_space<vmem>>, vector<16x256xf32>
      tpu.vector_store %arg7[%c0_16, %c0_17], %19 {strides = array<i32>} : memref<16x256xf32, #tpu.memory_space<vmem>>, vector<16x256xf32>,
    } else {
    }
    return
  }
  func.func @transform_0(%arg0: i32, %arg1: i32, %arg2: i32) -> (i32, i32) {
    %c0_i32 = arith.constant 0 : i32
    return %arg0, %arg2 : i32, i32
  }
  func.func @transform_1(%arg0: i32, %arg1: i32, %arg2: i32) -> (i32, i32) {
    %c0_i32 = arith.constant 0 : i32
    return %arg2, %arg1 : i32, i32
  }
  func.func @transform_2(%arg0: i32, %arg1: i32, %arg2: i32) -> (i32, i32) {
    %c0_i32 = arith.constant 0 : i32
    %c0_i32_0 = arith.constant 0 : i32
    return %c0_i32, %arg1 : i32, i32
  }
  func.func @transform_3(%arg0: i32, %arg1: i32, %arg2: i32) -> (i32, i32) {
    %c0_i32 = arith.constant 0 : i32
    %c0_i32_0 = arith.constant 0 : i32
    return %c0_i32, %arg1 : i32, i32
  }
  func.func @transform_4(%arg0: i32, %arg1: i32, %arg2: i32) -> (i32, i32) {
    %c0_i32 = arith.constant 0 : i32
    return %arg0, %arg1 : i32, i32
  }
}

</mosaic_0001>

<bundles_post_ra>
// kernel: _w8a16_matmul_padded.1
= control target key start
LH: loop header
LB: loop body
LE: loop exit
PB: predicated region body
PF: predicated region fallthrough
CT: control target
= control target key end

     0   :  { %9 = vsyncpa [#allocation3], 0  ;;  %s233_s15 = smov [#allocation2]   ;;  %s288_s0 = inlined_call_operand.vmem [shape: bf16[16,256], index: 0, kind: input, shape index: {}]   ;;  %s289_s1 = inlined_call_operand.hbm [shape: s8[256,256], index: 1, kind: input, shape index: {}]   ;;  %s290_s2 = inlined_call_operand.vmem [shape: f32[1,256], index: 2, kind: input, shape index: {}]   ;;  %s291_s3 = inlined_call_operand.vmem [shape: f32[1,256], index: 3, kind: input, shape index: {}]   ;;  %s292_s4 = inlined_call_operand.vmem [shape: f32[16,256], index: 4, kind: output, shape index: {}]  }
   0x1   :  { %s17_s16 = sshll.u32 %s233_s15, 4  ;;  %s18_s16 = int_to_ptr.vmem [resolvable:$true] %s17_s16 }
   0x2   :  { %s219_s17 = scalar_lea.vmem %s18_s16, 2048  ;;  %p224_p1 = scmp.lt.s32.totalorder %s18_s16, %s18_s16 }
   0x3   :  { %p220_p0 = scmp.ne.s32.totalorder %s18_s16, %s219_s17  ;;  %p225_p2 = scmp.lt.s32.totalorder %s219_s17, %s219_s17 }
   0x5   :  { %p226_p3 = por %p225_p2, %p224_p1 }
   0x7   :  { %p227_p4 = pnand %p226_p3, %p220_p0 }
   0x9   :  { %230 = shalt.err (!%p227_p4)
}
   0xa   :  { %s234_s18 = smov 256   ;;  %s235_s19 = smov 16  }
   0xb   :  { %23 = dma.hbm_to_vmem [thread:$0]  %s289_s1, 2048, %s18_s16, [#allocation3], %s234_s18, %s234_s18, %s235_s19  }
   0xc   :  { %231 = dma.done.wait [#allocation3], 2048  }
   0xd   :  { %232 = vsyncadd [#allocation3], 4294965248  ;;  %v48_v0 = vld [vmem:[#allocation2 + $0x38] sm:$0xff]  ;;  %v47_v1 = vld [vmem:[#allocation2 + $0x30] sm:$0xff]  ;;  %v163_v50 = vlaneseq }
   0xe   :  { %v70_v2 = vunpack.c.l.s8.bf16 %v48_v0  ;;  %v72_v3 = vunpack.c.h.s8.bf16 %v48_v0  ;;  %v71_v4 = vunpack.c.h.s8.bf16 %v47_v1  ;;  %v46_v5 = vld [vmem:[#allocation2 + $0x28] sm:$0xff]  ;;  %v69_v6 = vunpack.c.l.s8.bf16 %v47_v1  ;;  %v45_v8 = vld [vmem:[#allocation2 + $0x20] sm:$0xff]  ;;  %v44_v12 = vld [vmem:[#allocation2 + $0x18] sm:$0xff] }
   0xf   :  { %v68_v7 = vunpack.c.h.s8.bf16 %v46_v5  ;;  %v210_v9 = vld [vmem:[%s288_s0 + $0x4] ss:$8 sps:$4 sm:$0xff]   ;;  %v67_v10 = vunpack.c.h.s8.bf16 %v45_v8  ;;  %v66_v11 = vunpack.c.l.s8.bf16 %v46_v5  ;;  %v65_v13 = vunpack.c.l.s8.bf16 %v45_v8  ;;  %v43_v15 = vld [vmem:[#allocation2 + $0x10] sm:$0xff]  ;;  %v56_v24 = vld [vmem:[#allocation2 + $0x78] sm:$0xff] }
  0x10   :  { %103 = vmatprep.subr.bf16.mxu0 %v72_v3  ;;  %135 = vmatprep.mubr.bf16.mxu0 %v210_v9  ;;  %v64_v14 = vunpack.c.h.s8.bf16 %v44_v12  ;;  %v63_v16 = vunpack.c.h.s8.bf16 %v43_v15  ;;  %v62_v17 = vunpack.c.l.s8.bf16 %v44_v12  ;;  %v42_v18 = vld [vmem:[#allocation2 + $0x8] sm:$0xff]  ;;  %v61_v19 = vunpack.c.l.s8.bf16 %v43_v15  ;;  %v41_v21 = vld [vmem:[#allocation2] sm:$0xff]  ;;  %v55_v27 = vld [vmem:[#allocation2 + $0x70] sm:$0xff] }
  0x11   :  { %104 = vmatpush1.bf16.msra.mxu0 %v71_v4  ;;  %v60_v20 = vunpack.c.h.s8.bf16 %v42_v18  ;;  %v59_v22 = vunpack.c.h.s8.bf16 %v41_v21  ;;  %v58_v23 = vunpack.c.l.s8.bf16 %v42_v18  ;;  %v57_v25 = vunpack.c.l.s8.bf16 %v41_v21  ;;  %v54_v30 = vld [vmem:[#allocation2 + $0x68] sm:$0xff]  ;;  %v53_v33 = vld [vmem:[#allocation2 + $0x60] sm:$0xff]  ;;  %v52_v36 = vld [vmem:[#allocation2 + $0x58] sm:$0xff] }
  0x12   :  { %105 = vmatprep.subr.bf16.mxu0 %v70_v2  ;;  %v88_v26 = vunpack.c.h.s8.bf16 %v56_v24  ;;  %v87_v28 = vunpack.c.h.s8.bf16 %v55_v27  ;;  %v86_v29 = vunpack.c.l.s8.bf16 %v56_v24  ;;  %v85_v31 = vunpack.c.l.s8.bf16 %v55_v27  ;;  %v51_v39 = vld [vmem:[#allocation2 + $0x50] sm:$0xff]  ;;  %v50_v42 = vld [vmem:[#allocation2 + $0x48] sm:$0xff]  ;;  %v49_v45 = vld [vmem:[#allocation2 + $0x40] sm:$0xff] }
  0x13   :  { %v84_v32 = vunpack.c.h.s8.bf16 %v54_v30  ;;  %v83_v34 = vunpack.c.h.s8.bf16 %v53_v33  ;;  %v82_v35 = vunpack.c.l.s8.bf16 %v54_v30  ;;  %v81_v37 = vunpack.c.l.s8.bf16 %v53_v33  ;;  %v208_v49 = vld [vmem:[%s288_s0] ss:$8 sps:$4 sm:$0xff]  }
  0x14   :  { %v80_v38 = vunpack.c.h.s8.bf16 %v52_v36  ;;  %v79_v40 = vunpack.c.h.s8.bf16 %v51_v39  ;;  %v78_v41 = vunpack.c.l.s8.bf16 %v52_v36  ;;  %v77_v43 = vunpack.c.l.s8.bf16 %v51_v39  ;;  %v161_v53 = vld [vmem:[%s290_s2] sm:$0x3] }
  0x15   :  { %106 = vmatpush1.bf16.msra.mxu0 %v69_v6  ;;  %v76_v44 = vunpack.c.h.s8.bf16 %v50_v42  ;;  %v75_v46 = vunpack.c.h.s8.bf16 %v49_v45  ;;  %v74_v47 = vunpack.c.l.s8.bf16 %v50_v42  ;;  %v73_v48 = vunpack.c.l.s8.bf16 %v49_v45  ;;  %v177_v55 = vld [vmem:[%s291_s3] sm:$0x3] }
  0x16   :  { %107 = vmatprep.subr.bf16.mxu0 %v68_v7  ;;  %v164_v51 = vshrl.u32 %v163_v50, 7 }
  0x18   :  { %v165_v52 = vsub.s32 0, %v164_v51  ;;  %v169_v54 = vsub.s32 1, %v164_v51 }
  0x19   :  { %108 = vmatpush1.bf16.msra.mxu0 %v67_v10 }
  0x1a   :  { %109 = vmatprep.subr.bf16.mxu0 %v66_v11  ;;  %v166_v56 = vrot.slane %v161_v53, %v165_v52  ;;  %v182_v58 = vrot.slane %v177_v55, %v165_v52  ;;  %v170_v59 = vrot.slane %v161_v53, %v169_v54  ;;  %v186_v62 = vrot.slane %v177_v55, %v169_v54 }
  0x1d   :  { %110 = vmatpush1.bf16.msra.mxu0 %v65_v13 }
  0x1e   :  { %111 = vmatprep.subr.bf16.mxu0 %v64_v14 }
  0x21   :  { %112 = vmatpush1.bf16.msra.mxu0 %v63_v16 }
  0x22   :  { %113 = vmatprep.subr.bf16.mxu0 %v62_v17 }
  0x25   :  { %114 = vmatpush1.bf16.msra.mxu0 %v61_v19 }
  0x26   :  { %115 = vmatprep.subr.bf16.mxu0 %v60_v20 }
  0x29   :  { %116 = vmatpush1.bf16.msra.mxu0 %v59_v22 }
  0x2a   :  { %117 = vmatprep.subr.bf16.mxu0 %v58_v23 }
  0x2d   :  { %118 = vmatpush1.bf16.msra.mxu0 %v57_v25 }
  0x2e   :  { %119 = vmatprep.subr.bf16.mxu0 %v88_v26 }
  0x31   :  { %120 = vmatpush2.bf16.msra.mxu0 %v87_v28 }
  0x32   :  { %121 = vmatprep.subr.bf16.mxu0 %v86_v29 }
  0x35   :  { %122 = vmatpush2.bf16.msra.mxu0 %v85_v31 }
  0x36   :  { %123 = vmatprep.subr.bf16.mxu0 %v84_v32 }
  0x39   :  { %124 = vmatpush2.bf16.msra.mxu0 %v83_v34 }
  0x3a   :  { %125 = vmatprep.subr.bf16.mxu0 %v82_v35 }
  0x3d   :  { %126 = vmatpush2.bf16.msra.mxu0 %v81_v37 }
  0x3e   :  { %127 = vmatprep.subr.bf16.mxu0 %v80_v38 }
  0x41   :  { %128 = vmatpush2.bf16.msra.mxu0 %v79_v40 }
  0x42   :  { %129 = vmatprep.subr.bf16.mxu0 %v78_v41 }
  0x45   :  { %130 = vmatpush2.bf16.msra.mxu0 %v77_v43 }
  0x46   :  { %131 = vmatprep.subr.bf16.mxu0 %v76_v44 }
  0x49   :  { %132 = vmatpush2.bf16.msra.mxu0 %v75_v46 }
  0x4a   :  { %133 = vmatprep.subr.bf16.mxu0 %v74_v47 }
  0x4d   :  { %134 = vmatpush2.bf16.msra.mxu0 %v73_v48 }
  0x50   :  { %136 = vmatmul.mubr.bf16.vlgmr.msra.gmra.mxu0 %v208_v49 }
 0x110   :  { %v137_v57 = vpop.f32.mrf.mxu0 }
 0x111   :  { %v173_v61 = vmul.f32 %v166_v56, %v137_v57 }
 0x112   :  { %v139_v60 = vpop.f32.mrf.mxu0 }
 0x113   :  { %v189_v0 = vadd.f32 %v182_v58, %v173_v61  ;;  %v174_v1 = vmul.f32 %v170_v59, %v139_v60 }
 0x114   :  { %v141_v63 = vpop.f32.mrf.mxu0 }
 0x115   :  { %193 = vst [vmem:[%s292_s4] sm:$0xff] %v189_v0  ;;  %v190_v3 = vadd.f32 %v186_v62, %v174_v1  ;;  %v175_v4 = vmul.f32 %v166_v56, %v141_v63 }
 0x116   :  { %v143_v2 = vpop.f32.mrf.mxu0 }
 0x117   :  { %194 = vst [vmem:[%s292_s4 + $0x8] sm:$0xff] %v190_v3  ;;  %v191_v5 = vadd.f32 %v182_v58, %v175_v4  ;;  %v176_v6 = vmul.f32 %v170_v59, %v143_v2 }
 0x119   :  { %195 = vst [vmem:[%s292_s4 + $0x10] sm:$0xff] %v191_v5  ;;  %v192_v7 = vadd.f32 %v186_v62, %v176_v6 }
 0x11b   :  { %196 = vst [vmem:[%s292_s4 + $0x18] sm:$0xff] %v192_v7 }
 0x11c   :  { %201 = vsyncpa [#allocation3], 1 }

</bundles_post_ra>
